<compile_context>
chip_gen: v5e
topology: v5e:2x2
jax: 0.10.0
libtpu: 0.0.40
codegen_flags: <defaults>
</compile_context>

<pallas_src>
import jax
import jax.numpy as jnp
from jax.experimental import pallas as pl
from jax.experimental.pallas import tpu as pltpu

IN_F, H1, H2, OUT_F = 956, 50, 8, 1


def _round_up(n, m):
    return ((n + m - 1) // m) * m


def mlp_kernel(x_ref, w1_ref, b1_ref, w2_ref, b2_ref, w3t_ref, b3_ref, o_ref):
    # Layer 1: (tile, 956) @ (956, 50) on the MXU, f32 accumulation.
    h1 = jnp.dot(x_ref[...], w1_ref[...], preferred_element_type=jnp.float32)
    h1 = jnp.maximum(h1 + b1_ref[...], 0.0)

    # Layer 2: (tile, 50) @ (50, 8) on the MXU, f32 accumulation.
    h2 = jnp.dot(h1, w2_ref[...], preferred_element_type=jnp.float32)
    h2 = jnp.maximum(h2 + b2_ref[...], 0.0)

    # Layer 3: K=8, N=1 -> broadcast-mul + lane reduce (skip the MXU entirely).
    h3 = jnp.sum(h2 * w3t_ref[...], axis=-1, keepdims=True) + b3_ref[...]

    # Sigmoid: exp rides the EUP slot; exact divide keeps f32 parity with the
    # PyTorch reference.  Garbage rows in a partial last block flow through
    # harmlessly (per-row independent) and are dropped by the masked writeback.
    o_ref[...] = (1.0 / (1.0 + jnp.exp(-h3))).astype(o_ref.dtype)


def mlp_forward(x, params, *, tile_b=2048):
    """Fused MLP forward.

    If the caller stores x in bfloat16 at rest, the kernel streams it as-is
    (halving the dominant HBM traffic); x is never cast inside this wrapper.
    """
    w1, b1, w2, b2, w3, b3 = params
    B, F = x.shape
    assert F == IN_F

    # bf16-at-rest fast path: only the tiny layer-1 weight is cast to match x.
    if jnp.dtype(x.dtype).itemsize == 2:
        w1 = w1.astype(x.dtype)

    # (8,1) -> (1,8) so layer 3 is a clean broadcast-mul + lane reduce.
    w3t = w3.T

    # Sublane granule: 8 rows for 32-bit x, 16 rows for 16-bit x.
    granule = 16 if jnp.dtype(x.dtype).itemsize == 2 else 8
    tile_b = max(granule, _round_up(int(tile_b), granule))

    # No padding: grid = cdiv(B, tile); Pallas masks the partial last block.
    # Guarantee >=2 grid steps when possible so ("parallel",) can use both
    # TensorCores on v7x.
    if pl.cdiv(B, tile_b) >= 2:
        tile = tile_b
    else:
        tile = max(granule, _round_up(pl.cdiv(B, 2), granule))
    grid = (pl.cdiv(B, tile),)

    def resident(shape):
        # Constant index_map -> weights/biases stay VMEM-resident across steps.
        return pl.BlockSpec(shape, lambda i: (0, 0))

    in_specs = [
        pl.BlockSpec((tile, IN_F), lambda i: (i, 0)),  # x: streamed, double-buffered
        resident((IN_F, H1)), resident((1, H1)),       # w1, b1
        resident((H1, H2)), resident((1, H2)),         # w2, b2
        resident((1, H2)), resident((1, OUT_F)),       # w3^T, b3
    ]
    out_specs = pl.BlockSpec((tile, OUT_F), lambda i: (i, 0))

    weight_bytes = sum(
        int(a.size) * a.dtype.itemsize for a in (w1, b1, w2, b2, w3t, b3)
    )
    cost = pl.CostEstimate(
        flops=2 * B * (IN_F * H1 + H1 * H2 + H2 * OUT_F),
        transcendentals=B,
        bytes_accessed=B * IN_F * jnp.dtype(x.dtype).itemsize
        + B * OUT_F * 4
        + weight_bytes,
    )

    return pl.pallas_call(
        mlp_kernel,
        out_shape=jax.ShapeDtypeStruct((B, OUT_F), jnp.float32),
        grid=grid,
        in_specs=in_specs,
        out_specs=out_specs,
        compiler_params=pltpu.CompilerParams(
            dimension_semantics=("parallel",),   # shard batch tiles across TCs
            vmem_limit_bytes=40 * 1024 * 1024,   # ~19 MiB buffers at tile=2048
        ),
        cost_estimate=cost,
    )(x, w1, b1, w2, b2, w3t, b3)


def init_linear(key, fan_in, fan_out):
    # Mirrors torch.nn.Linear default init: U(-1/sqrt(fan_in), 1/sqrt(fan_in)).
    kw, kb = jax.random.split(key)
    bound = 1.0 / jnp.sqrt(jnp.float32(fan_in))
    # Stored as (in, out) so the kernel computes x @ W + b.
    w = jax.random.uniform(kw, (fan_in, fan_out), jnp.float32, -bound, bound)
    b = jax.random.uniform(kb, (1, fan_out), jnp.float32, -bound, bound)
    return w, b


def reference_forward(x, params):
    w1, b1, w2, b2, w3, b3 = params
    h1 = jnp.maximum(x @ w1 + b1, 0.0)
    h2 = jnp.maximum(h1 @ w2 + b2, 0.0)
    return jax.nn.sigmoid(h2 @ w3 + b3)


if __name__ == "__main__":
    key = jax.random.PRNGKey(0)
    kx, k1, k2, k3 = jax.random.split(key, 4)

    B = 16
    x = jax.random.normal(kx, (B, IN_F), jnp.float32)
    params = (
        *init_linear(k1, IN_F, H1),
        *init_linear(k2, H1, H2),
        *init_linear(k3, H2, OUT_F),
    )

    ref = reference_forward(x, params)

    # f32 path (small batch -> tile is halved to give 2 grid steps).
    out = jax.block_until_ready(mlp_forward(x, params))
    assert out.shape == (B, OUT_F)
    assert jnp.allclose(out, ref, atol=1e-5, rtol=1e-5)

    # bf16-at-rest input path (caller already stores x in bf16); looser tol.
    out_bf16 = jax.block_until_ready(mlp_forward(x.astype(jnp.bfloat16), params))
    assert out_bf16.shape == (B, OUT_F)
    assert jnp.allclose(out_bf16, ref, atol=2e-2, rtol=2e-2)

    # Non-multiple-of-tile batch exercises the no-pad partial-block writeback.
    out_small = jax.block_until_ready(mlp_forward(x[:13], params, tile_b=8))
    assert out_small.shape == (13, OUT_F)
    assert jnp.allclose(out_small, ref[:13], atol=1e-5, rtol=1e-5)

    print("KERNEL_OK")
</pallas_src>

<mosaic_0001>
module attributes {stable_mosaic.version = 11 : i64} {
  func.func @mlp_kernel(%arg0: i32, %arg1: memref<8x956xf32, #tpu.memory_space<vmem>>, %arg2: memref<956x50xf32, #tpu.memory_space<vmem>>, %arg3: memref<1x50xf32, #tpu.memory_space<vmem>>, %arg4: memref<50x8xf32, #tpu.memory_space<vmem>>, %arg5: memref<1x8xf32, #tpu.memory_space<vmem>>, %arg6: memref<1x8xf32, #tpu.memory_space<vmem>>, %arg7: memref<1x1xf32, #tpu.memory_space<vmem>>, %arg8: memref<8x1xf32, #tpu.memory_space<vmem>>) attributes {dimension_semantics = [#tpu.dimension_semantics<parallel>], iteration_bounds = array<i64: 2>, scalar_prefetch = 0 : i64, scratch_operands = 0 : i64, tpu.core_type = #tpu.core_type<tc>, window_params = [{transform_indices = @transform_0, window_bounds = array<i64: 8, 956>}, {pipeline_mode = #tpu.pipeline_mode<synchronous>, transform_indices = @transform_1, window_bounds = array<i64: 956, 50>}, {pipeline_mode = #tpu.pipeline_mode<synchronous>, transform_indices = @transform_2, window_bounds = array<i64: 1, 50>}, {pipeline_mode = #tpu.pipeline_mode<synchronous>, transform_indices = @transform_3, window_bounds = array<i64: 50, 8>}, {pipeline_mode = #tpu.pipeline_mode<synchronous>, transform_indices = @transform_4, window_bounds = array<i64: 1, 8>}, {pipeline_mode = #tpu.pipeline_mode<synchronous>, transform_indices = @transform_5, window_bounds = array<i64: 1, 8>}, {pipeline_mode = #tpu.pipeline_mode<synchronous>, transform_indices = @transform_6, window_bounds = array<i64: 1, 1>}, {transform_indices = @transform_7, window_bounds = array<i64: 8, 1>}]} {
    %c0 = arith.constant 0 : index
    %c0_0 = arith.constant 0 : index
    %0 = vector.load %arg1[%c0, %c0_0] : memref<8x956xf32, #tpu.memory_space<vmem>>, vector<8x956xf32>
    %c0_1 = arith.constant 0 : index
    %c0_2 = arith.constant 0 : index
    %1 = vector.load %arg2[%c0_1, %c0_2] : memref<956x50xf32, #tpu.memory_space<vmem>>, vector<956x50xf32>
    %cst = arith.constant dense<0.000000e+00> : vector<8x50xf32>
    %2 = tpu.matmul %0, %1, %cst {dimension_numbers = #tpu.dot_dimension_numbers<[1], [0], [0], [1], [0, 0, 1, 1], [], []>} : vector<8x956xf32>, vector<956x50xf32>, vector<8x50xf32> -> vector<8x50xf32>
    %c0_3 = arith.constant 0 : index
    %c0_4 = arith.constant 0 : index
    %3 = vector.load %arg3[%c0_3, %c0_4] : memref<1x50xf32, #tpu.memory_space<vmem>>, vector<1x50xf32>
    %4 = vector.broadcast %3 : vector<1x50xf32> to vector<8x50xf32>
    %5 = arith.addf %2, %4 : vector<8x50xf32>
    %cst_5 = arith.constant 0.000000e+00 : f32
    %6 = vector.broadcast %cst_5 : f32 to vector<8x50xf32>
    %7 = arith.maximumf %5, %6 : vector<8x50xf32>
    %c0_6 = arith.constant 0 : index
    %c0_7 = arith.constant 0 : index
    %8 = vector.load %arg4[%c0_6, %c0_7] : memref<50x8xf32, #tpu.memory_space<vmem>>, vector<50x8xf32>
    %cst_8 = arith.constant dense<0.000000e+00> : vector<8x8xf32>
    %9 = tpu.matmul %7, %8, %cst_8 {dimension_numbers = #tpu.dot_dimension_numbers<[1], [0], [0], [1], [0, 0, 1, 1], [], []>} : vector<8x50xf32>, vector<50x8xf32>, vector<8x8xf32> -> vector<8x8xf32>
    %c0_9 = arith.constant 0 : index
    %c0_10 = arith.constant 0 : index
    %10 = vector.load %arg5[%c0_9, %c0_10] : memref<1x8xf32, #tpu.memory_space<vmem>>, vector<1x8xf32>
    %11 = vector.broadcast %10 : vector<1x8xf32> to vector<8x8xf32>
    %12 = arith.addf %9, %11 : vector<8x8xf32>
    %cst_11 = arith.constant 0.000000e+00 : f32
    %13 = vector.broadcast %cst_11 : f32 to vector<8x8xf32>
    %14 = arith.maximumf %12, %13 : vector<8x8xf32>
    %c0_12 = arith.constant 0 : index
    %c0_13 = arith.constant 0 : index
    %15 = vector.load %arg6[%c0_12, %c0_13] : memref<1x8xf32, #tpu.memory_space<vmem>>, vector<1x8xf32>
    %16 = vector.broadcast %15 : vector<1x8xf32> to vector<8x8xf32>
    %17 = arith.mulf %14, %16 : vector<8x8xf32>
    %cst_14 = arith.constant dense<0.000000e+00> : vector<8xf32>
    %18 = vector.multi_reduction <add>, %17, %cst_14 [1] : vector<8x8xf32> to vector<8xf32>
    %19 = vector.shape_cast %18 : vector<8xf32> to vector<8x1xf32>
    %c0_15 = arith.constant 0 : index
    %c0_16 = arith.constant 0 : index
    %20 = vector.load %arg7[%c0_15, %c0_16] : memref<1x1xf32, #tpu.memory_space<vmem>>, vector<1x1xf32>
    %21 = vector.broadcast %20 : vector<1x1xf32> to vector<8x1xf32>
    %22 = arith.addf %19, %21 : vector<8x1xf32>
    %cst_17 = arith.constant 0.000000e+00 : f32
    %23 = vector.broadcast %cst_17 : f32 to vector<8x1xf32>
    %24 = arith.subf %23, %22 : vector<8x1xf32>
    %25 = math.exp %24 : vector<8x1xf32>
    %cst_18 = arith.constant 1.000000e+00 : f32
    %26 = vector.broadcast %cst_18 : f32 to vector<8x1xf32>
    %27 = arith.addf %26, %25 : vector<8x1xf32>
    %cst_19 = arith.constant 1.000000e+00 : f32
    %28 = vector.broadcast %cst_19 : f32 to vector<8x1xf32>
    %29 = arith.divf %28, %27 : vector<8x1xf32>
    %c0_20 = arith.constant 0 : index
    %c0_21 = arith.constant 0 : index
    %30 = vector.load %arg8[%c0_20, %c0_21] : memref<8x1xf32, #tpu.memory_space<vmem>>, vector<8x1xf32>
    tpu.vector_store %arg8[%c0_20, %c0_21], %29 {strides = array<i32>} : memref<8x1xf32, #tpu.memory_space<vmem>>, vector<8x1xf32>,
    return
  }
  func.func @transform_0(%arg0: i32) -> (i32, i32) {
    %c0_i32 = arith.constant 0 : i32
    %c0_i32_0 = arith.constant 0 : i32
    return %arg0, %c0_i32 : i32, i32
  }
  func.func @transform_1(%arg0: i32) -> (i32, i32) {
    %c0_i32 = arith.constant 0 : i32
    %c0_i32_0 = arith.constant 0 : i32
    %c0_i32_1 = arith.constant 0 : i32
    return %c0_i32, %c0_i32_0 : i32, i32
  }
  func.func @transform_2(%arg0: i32) -> (i32, i32) {
    %c0_i32 = arith.constant 0 : i32
    %c0_i32_0 = arith.constant 0 : i32
    %c0_i32_1 = arith.constant 0 : i32
    return %c0_i32, %c0_i32_0 : i32, i32
  }
  func.func @transform_3(%arg0: i32) -> (i32, i32) {
    %c0_i32 = arith.constant 0 : i32
    %c0_i32_0 = arith.constant 0 : i32
    %c0_i32_1 = arith.constant 0 : i32
    return %c0_i32, %c0_i32_0 : i32, i32
  }
  func.func @transform_4(%arg0: i32) -> (i32, i32) {
    %c0_i32 = arith.constant 0 : i32
    %c0_i32_0 = arith.constant 0 : i32
    %c0_i32_1 = arith.constant 0 : i32
    return %c0_i32, %c0_i32_0 : i32, i32
  }
  func.func @transform_5(%arg0: i32) -> (i32, i32) {
    %c0_i32 = arith.constant 0 : i32
    %c0_i32_0 = arith.constant 0 : i32
    %c0_i32_1 = arith.constant 0 : i32
    return %c0_i32, %c0_i32_0 : i32, i32
  }
  func.func @transform_6(%arg0: i32) -> (i32, i32) {
    %c0_i32 = arith.constant 0 : i32
    %c0_i32_0 = arith.constant 0 : i32
    %c0_i32_1 = arith.constant 0 : i32
    return %c0_i32, %c0_i32_0 : i32, i32
  }
  func.func @transform_7(%arg0: i32) -> (i32, i32) {
    %c0_i32 = arith.constant 0 : i32
    %c0_i32_0 = arith.constant 0 : i32
    return %arg0, %c0_i32 : i32, i32
  }
}

</mosaic_0001>

<bundles_post_ra>
// kernel: tpu_custom_call.1
= control target key start
LH: loop header
LB: loop body
LE: loop exit
PB: predicated region body
PF: predicated region fallthrough
CT: control target
= control target key end

     0   :  { %s790_s26 = smov 0   ;;  %s1221_s0 = inlined_call_operand.vmem [shape: f32[16,956], index: 0, kind: input, shape index: {}]   ;;  %s1222_s1 = inlined_call_operand.vmem [shape: f32[956,50], index: 1, kind: input, shape index: {}]   ;;  %s1223_s2 = inlined_call_operand.vmem [shape: f32[1,50], index: 2, kind: input, shape index: {}]   ;;  %s1224_s3 = inlined_call_operand.vmem [shape: f32[50,8], index: 3, kind: input, shape index: {}]   ;;  %s1225_s4 = inlined_call_operand.vmem [shape: f32[1,8], index: 4, kind: input, shape index: {}]   ;;  %s1226_s5 = inlined_call_operand.vmem [shape: f32[1,8], index: 5, kind: input, shape index: {}]   ;;  %s1227_s6 = inlined_call_operand.<no memory space> [shape: f32[1,1], index: 6, kind: input, shape index: {}]   ;;  %s1228_s7 = inlined_call_operand.vmem [shape: f32[16,1], index: 7, kind: output, shape index: {}]  }
   0x1   :  { %v12_v0 = vstv %s1227_s6 }
   0x2   :  { %13 = vst [vmem:[#allocation2] sm:$0x1] %v12_v0 }
   0x3 LB: > { %s708_s27 = sadd.s32 4294967295, %s745_s26   ;;  %p712_p0 = scmp.ge.s32.totalorder %s745_s26, 1  ;;  %s745_s26 = sphi %s790_s26, %s19_s26  }
   0x4   : > { %p239_p1 = scmp.lt.s32.totalorder %s745_s26, 3 }
   0x6   : > { %p240_p2 = pnand %p712_p0, %p239_p1 }
   0x7   : > { %p998_p3 = scmp.lt.s32.totalorder (!%p240_p2), %s708_s27, 1 }
   0x8   : > { %243 = sbr.rel (%p240_p2) target bundleno = 503 (0x1f7), region = 48 }
   0xd   : > { %v334_v1 = vld [vmem:[%s1222_s1 + $0x178] sm:$0xff]  ;;  %v333_v3 = vld [vmem:[%s1222_s1 + $0x170] sm:$0xff]  ;;  %v332_v6 = vld [vmem:[%s1222_s1 + $0x168] sm:$0xff]  ;;  %s1231_s27 = smov (!%p998_p3, %s708_s27), 1  ;;  %vm415_vm0 = vcmask 1043456   ;;  %vm411_vm1 = vcmask 490496  }
   0xe   : > { %v302_v2 = vld [vmem:[%s1222_s1 + $0x78] sm:$0xff]  ;;  %459 = vmatpush.msra.mxu2 %v334_v1  ;;  %v301_v4 = vld [vmem:[%s1222_s1 + $0x70] sm:$0xff]  ;;  %v300_v7 = vld [vmem:[%s1222_s1 + $0x68] sm:$0xff]  ;;  %s722_s15 = sshll.u32 %s1231_s27, 6  ;;  %vm595_vm2 = vcmask 1041408   ;;  %vm591_vm3 = vcmask 408576  }
   0xf   : > { %419 = vmatpush.msra.mxu0 %v302_v2  ;;  %v318_v5 = vld [vmem:[%s1222_s1 + $0xf8] sm:$0xff]  ;;  %v317_v8 = vld [vmem:[%s1222_s1 + $0xf0] sm:$0xff]  ;;  %v316_v9 = vld [vmem:[%s1222_s1 + $0xe8] sm:$0xff]  ;;  %s1078_s8 = scalar_lea.vmem %s1221_s0, %s722_s15  ;;  %vm625_vm4 = vcmask 64512   ;;  %s715_s30 = sshll.u32 %s1231_s27, 3  ;;  %vm653_vm8 = vcmask 7168  }
  0x10   : > { %439 = vmatpush.msra.mxu1 %v318_v5  ;;  %460 = vmatpush.msra.mxu2 %v333_v3  ;;  %v331_v10 = vld [vmem:[%s1222_s1 + $0x160] sm:$0xff]  ;;  %v330_v13 = vld [vmem:[%s1222_s1 + $0x158] sm:$0xff]  ;;  %v329_v16 = vld [vmem:[%s1222_s1 + $0x150] sm:$0xff]  ;;  %s278_s11 = scalar_lea.vmem %s1228_s7, %s715_s30 }
  0x11   : > { %420 = vmatpush.msra.mxu0 %v301_v4  ;;  %v299_v11 = vld [vmem:[%s1222_s1 + $0x60] sm:$0xff]  ;;  %v298_v14 = vld [vmem:[%s1222_s1 + $0x58] sm:$0xff]  ;;  %v297_v17 = vld [vmem:[%s1222_s1 + $0x50] sm:$0xff] }
  0x12   : > { %440 = vmatpush.msra.mxu1 %v317_v8  ;;  %461 = vmatpush.msra.mxu2 %v332_v6  ;;  %v315_v12 = vld [vmem:[%s1222_s1 + $0xe0] sm:$0xff]  ;;  %v314_v15 = vld [vmem:[%s1222_s1 + $0xd8] sm:$0xff]  ;;  %v313_v18 = vld [vmem:[%s1222_s1 + $0xd0] sm:$0xff] }
  0x13   : > { %421 = vmatpush.msra.mxu0 %v300_v7  ;;  %v350_v19 = vld [vmem:[%s1222_s1 + $0x1f8] sm:$0xff]  ;;  %v328_v20 = vld [vmem:[%s1222_s1 + $0x148] sm:$0xff]  ;;  %v349_v22 = vld [vmem:[%s1222_s1 + $0x1f0] sm:$0xff] }
  0x14   : > { %441 = vmatpush.msra.mxu1 %v316_v9  ;;  %462 = vmatpush.msra.mxu2 %v331_v10  ;;  %v296_v21 = vld [vmem:[%s1222_s1 + $0x48] sm:$0xff]  ;;  %v327_v25 = vld [vmem:[%s1222_s1 + $0x140] sm:$0xff]  ;;  %v326_v29 = vld [vmem:[%s1222_s1 + $0x138] sm:$0xff] }
  0x15   : > { %422 = vmatpush.msra.mxu0 %v299_v11  ;;  %479 = vmatpush.msra.mxu3 %v350_v19  ;;  %v312_v23 = vld [vmem:[%s1222_s1 + $0xc8] sm:$0xff]  ;;  %v295_v26 = vld [vmem:[%s1222_s1 + $0x40] sm:$0xff]  ;;  %v294_v30 = vld [vmem:[%s1222_s1 + $0x38] sm:$0xff] }
  0x16   : > { %442 = vmatpush.msra.mxu1 %v315_v12  ;;  %463 = vmatpush.msra.mxu2 %v330_v13  ;;  %v348_v24 = vld [vmem:[%s1222_s1 + $0x1e8] sm:$0xff]  ;;  %v311_v27 = vld [vmem:[%s1222_s1 + $0xc0] sm:$0xff]  ;;  %v310_v31 = vld [vmem:[%s1222_s1 + $0xb8] sm:$0xff] }
  0x17   : > { %423 = vmatpush.msra.mxu0 %v298_v14  ;;  %480 = vmatpush.msra.mxu3 %v349_v22  ;;  %v347_v28 = vld [vmem:[%s1222_s1 + $0x1e0] sm:$0xff]  ;;  %v346_v32 = vld [vmem:[%s1222_s1 + $0x1d8] sm:$0xff]  ;;  %v325_v33 = vld [vmem:[%s1222_s1 + $0x130] sm:$0xff] }
  0x18   : > { %443 = vmatpush.msra.mxu1 %v314_v15  ;;  %464 = vmatpush.msra.mxu2 %v329_v16  ;;  %v293_v34 = vld [vmem:[%s1222_s1 + $0x30] sm:$0xff]  ;;  %v324_v37 = vld [vmem:[%s1222_s1 + $0x128] sm:$0xff]  ;;  %v323_v41 = vld [vmem:[%s1222_s1 + $0x120] sm:$0xff] }
  0x19   : > { %424 = vmatpush.msra.mxu0 %v297_v17  ;;  %481 = vmatpush.msra.mxu3 %v348_v24  ;;  %v309_v35 = vld [vmem:[%s1222_s1 + $0xb0] sm:$0xff]  ;;  %v292_v38 = vld [vmem:[%s1222_s1 + $0x28] sm:$0xff]  ;;  %v291_v42 = vld [vmem:[%s1222_s1 + $0x20] sm:$0xff] }
  0x1a   : > { %444 = vmatpush.msra.mxu1 %v313_v18  ;;  %465 = vmatpush.msra.mxu2 %v328_v20  ;;  %v345_v36 = vld [vmem:[%s1222_s1 + $0x1d0] sm:$0xff]  ;;  %v308_v39 = vld [vmem:[%s1222_s1 + $0xa8] sm:$0xff]  ;;  %v307_v43 = vld [vmem:[%s1222_s1 + $0xa0] sm:$0xff] }
  0x1b   : > { %425 = vmatpush.msra.mxu0 %v296_v21  ;;  %482 = vmatpush.msra.mxu3 %v347_v28  ;;  %v344_v40 = vld [vmem:[%s1222_s1 + $0x1c8] sm:$0xff]  ;;  %v343_v44 = vld [vmem:[%s1222_s1 + $0x1c0] sm:$0xff]  ;;  %v322_v45 = vld [vmem:[%s1222_s1 + $0x118] sm:$0xff] }
  0x1c   : > { %445 = vmatpush.msra.mxu1 %v312_v23  ;;  %466 = vmatpush.msra.mxu2 %v327_v25  ;;  %v290_v46 = vld [vmem:[%s1222_s1 + $0x18] sm:$0xff]  ;;  %v321_v49 = vld [vmem:[%s1222_s1 + $0x110] sm:$0xff]  ;;  %v320_v53 = vld [vmem:[%s1222_s1 + $0x108] sm:$0xff] }
  0x1d   : > { %426 = vmatpush.msra.mxu0 %v295_v26  ;;  %483 = vmatpush.msra.mxu3 %v346_v32  ;;  %v306_v47 = vld [vmem:[%s1222_s1 + $0x98] sm:$0xff]  ;;  %v289_v50 = vld [vmem:[%s1222_s1 + $0x10] sm:$0xff]  ;;  %v288_v54 = vld [vmem:[%s1222_s1 + $0x8] sm:$0xff] }
  0x1e   : > { %446 = vmatpush.msra.mxu1 %v311_v27  ;;  %467 = vmatpush.msra.mxu2 %v326_v29  ;;  %v342_v48 = vld [vmem:[%s1222_s1 + $0x1b8] sm:$0xff]  ;;  %v305_v51 = vld [vmem:[%s1222_s1 + $0x90] sm:$0xff]  ;;  %v304_v55 = vld [vmem:[%s1222_s1 + $0x88] sm:$0xff] }
  0x1f   : > { %427 = vmatpush.msra.mxu0 %v294_v30  ;;  %484 = vmatpush.msra.mxu3 %v345_v36  ;;  %v341_v52 = vld [vmem:[%s1222_s1 + $0x1b0] sm:$0xff]  ;;  %v340_v56 = vld [vmem:[%s1222_s1 + $0x1a8] sm:$0xff]  ;;  %v319_v57 = vld [vmem:[%s1222_s1 + $0x100] sm:$0xff] }
  0x20   : > { %447 = vmatpush.msra.mxu1 %v310_v31  ;;  %468 = vmatpush.msra.mxu2 %v325_v33  ;;  %v287_v58 = vld [vmem:[%s1222_s1] sm:$0xff]  ;;  %v398_v59 = vld [vmem:[%s1222_s1 + $0x378] sm:$0xff]  ;;  %v397_v63 = vld [vmem:[%s1222_s1 + $0x370] sm:$0xff] }
  0x21   : > { %428 = vmatpush.msra.mxu0 %v293_v34  ;;  %485 = vmatpush.msra.mxu3 %v344_v40  ;;  %v366_v60 = vld [vmem:[%s1222_s1 + $0x278] sm:$0xff]  ;;  %v303_v61 = vld [vmem:[%s1222_s1 + $0x80] sm:$0xff]  ;;  %v365_v0 = vld [vmem:[%s1222_s1 + $0x270] sm:$0xff] }
  0x22   : > { %448 = vmatpush.msra.mxu1 %v309_v35  ;;  %469 = vmatpush.msra.mxu2 %v324_v37  ;;  %v339_v62 = vld [vmem:[%s1222_s1 + $0x1a0] sm:$0xff]  ;;  %v382_v1 = vld [vmem:[%s1222_s1 + $0x2f8] sm:$0xff]  ;;  %v396_v3 = vld [vmem:[%s1222_s1 + $0x368] sm:$0xff] }
  0x23   : > { %429 = vmatpush.msra.mxu0 %v292_v38  ;;  %486 = vmatpush.msra.mxu3 %v343_v44  ;;  %v338_v2 = vld [vmem:[%s1222_s1 + $0x198] sm:$0xff]  ;;  %v364_v4 = vld [vmem:[%s1222_s1 + $0x268] sm:$0xff]  ;;  %v381_v5 = vld [vmem:[%s1222_s1 + $0x2f0] sm:$0xff] }
  0x24   : > { %449 = vmatpush.msra.mxu1 %v308_v39  ;;  %470 = vmatpush.msra.mxu2 %v323_v41  ;;  %v337_v6 = vld [vmem:[%s1222_s1 + $0x190] sm:$0xff]  ;;  %v395_v7 = vld [vmem:[%s1222_s1 + $0x360] sm:$0xff]  ;;  %v380_v9 = vld [vmem:[%s1222_s1 + $0x2e8] sm:$0xff] }
  0x25   : > { %430 = vmatpush.msra.mxu0 %v291_v42  ;;  %487 = vmatpush.msra.mxu3 %v342_v48  ;;  %v363_v8 = vld [vmem:[%s1222_s1 + $0x260] sm:$0xff]  ;;  %v336_v10 = vld [vmem:[%s1222_s1 + $0x188] sm:$0xff]  ;;  %v394_v11 = vld [vmem:[%s1222_s1 + $0x358] sm:$0xff] }
  0x26   : > { %450 = vmatpush.msra.mxu1 %v307_v43  ;;  %471 = vmatpush.msra.mxu2 %v322_v45  ;;  %v362_v12 = vld [vmem:[%s1222_s1 + $0x258] sm:$0xff]  ;;  %v379_v13 = vld [vmem:[%s1222_s1 + $0x2e0] sm:$0xff]  ;;  %v393_v15 = vld [vmem:[%s1222_s1 + $0x350] sm:$0xff] }
  0x27   : > { %431 = vmatpush.msra.mxu0 %v290_v46  ;;  %488 = vmatpush.msra.mxu3 %v341_v52  ;;  %v335_v14 = vld [vmem:[%s1222_s1 + $0x180] sm:$0xff]  ;;  %v361_v16 = vld [vmem:[%s1222_s1 + $0x250] sm:$0xff]  ;;  %v378_v17 = vld [vmem:[%s1222_s1 + $0x2d8] sm:$0xff] }
  0x28   : > { %451 = vmatpush.msra.mxu1 %v306_v47  ;;  %472 = vmatpush.msra.mxu2 %v321_v49  ;;  %v406_v18 = vld [vmem:[%s1222_s1 + $0x3b8] sm:$0xf]  ;;  %v392_v19 = vld [vmem:[%s1222_s1 + $0x348] sm:$0xff]  ;;  %v377_v21 = vld [vmem:[%s1222_s1 + $0x2d0] sm:$0xff] }
  0x29   : > { %432 = vmatpush.msra.mxu0 %v289_v50  ;;  %489 = vmatpush.msra.mxu3 %v340_v56  ;;  %v360_v20 = vld [vmem:[%s1222_s1 + $0x248] sm:$0xff]  ;;  %v391_v22 = vld [vmem:[%s1222_s1 + $0x340] sm:$0xff]  ;;  %v405_v23 = vld [vmem:[%s1222_s1 + $0x3b0] sm:$0xff] }
  0x2a   : > { %452 = vmatpush.msra.mxu1 %v305_v51  ;;  %473 = vmatpush.msra.mxu2 %v320_v53  ;;  %v359_v24 = vld [vmem:[%s1222_s1 + $0x240] sm:$0xff]  ;;  %v376_v25 = vld [vmem:[%s1222_s1 + $0x2c8] sm:$0xff]  ;;  %v390_v27 = vld [vmem:[%s1222_s1 + $0x338] sm:$0xff] }
  0x2b   : > { %433 = vmatpush.msra.mxu0 %v288_v54  ;;  %490 = vmatpush.msra.mxu3 %v339_v62  ;;  %v404_v26 = vld [vmem:[%s1222_s1 + $0x3a8] sm:$0xff]  ;;  %v358_v28 = vld [vmem:[%s1222_s1 + $0x238] sm:$0xff]  ;;  %v375_v29 = vld [vmem:[%s1222_s1 + $0x2c0] sm:$0xff] }
  0x2c   : > { %453 = vmatpush.msra.mxu1 %v304_v55  ;;  %474 = vmatpush.msra.mxu2 %v319_v57  ;;  %v281_v30 = vld [vmem:[%s1078_s8 + $0x10] sm:$0xff]  ;;  %v374_v33 = vld [vmem:[%s1222_s1 + $0x2b8] sm:$0xff]  ;;  %v403_v34 = vld [vmem:[%s1222_s1 + $0x3a0] sm:$0xff] }
  0x2d   : > { %434 = vmatpush.msra.mxu0 %v287_v58  ;;  %491 = vmatpush.msra.mxu3 %v338_v2  ;;  %v389_v31 = vld [vmem:[%s1222_s1 + $0x330] sm:$0xff]  ;;  %v388_v35 = vld [vmem:[%s1222_s1 + $0x328] sm:$0xff]  ;;  %v279_v38 = vld [vmem:[%s1078_s8] sm:$0xff] }
  0x2e   : > { %539 = vmatpush.msrb.mxu2 %v398_v59  ;;  %454 = vmatpush.msra.mxu1 %v303_v61  ;;  %v357_v32 = vld [vmem:[%s1222_s1 + $0x230] sm:$0xff]  ;;  %v356_v36 = vld [vmem:[%s1222_s1 + $0x228] sm:$0xff]  ;;  %v387_v39 = vld [vmem:[%s1222_s1 + $0x320] sm:$0xff] }
  0x2f   : > { %499 = vmatpush.msrb.mxu0 %v366_v60  ;;  %492 = vmatpush.msra.mxu3 %v337_v6  ;;  %v373_v37 = vld [vmem:[%s1222_s1 + $0x2b0] sm:$0xff]  ;;  %v355_v40 = vld [vmem:[%s1222_s1 + $0x220] sm:$0xff]  ;;  %v372_v41 = vld [vmem:[%s1222_s1 + $0x2a8] sm:$0xff] }
  0x30   : > { %540 = vmatpush.msrb.mxu2 %v397_v63  ;;  %519 = vmatpush.msrb.mxu1 %v382_v1  ;;  %v282_v42 = vld [vmem:[%s1078_s8 + $0x18] sm:$0xff]  ;;  %v371_v45 = vld [vmem:[%s1222_s1 + $0x2a0] sm:$0xff]  ;;  %v385_v47 = vld [vmem:[%s1222_s1 + $0x310] sm:$0xff] }
  0x31   : > { %500 = vmatpush.msrb.mxu0 %v365_v0  ;;  %493 = vmatpush.msra.mxu3 %v336_v10  ;;  %v386_v43 = vld [vmem:[%s1222_s1 + $0x318] sm:$0xff]  ;;  %v280_v48 = vld [vmem:[%s1078_s8 + $0x8] sm:$0xff]  ;;  %v353_v49 = vld [vmem:[%s1222_s1 + $0x210] sm:$0xff] }
  0x32   : > { %541 = vmatpush.msrb.mxu2 %v396_v3  ;;  %520 = vmatpush.msrb.mxu1 %v381_v5  ;;  %v354_v44 = vld [vmem:[%s1222_s1 + $0x218] sm:$0xff]  ;;  %v384_v51 = vld [vmem:[%s1222_s1 + $0x308] sm:$0xff]  ;;  %v401_v52 = vld [vmem:[%s1222_s1 + $0x390] sm:$0xff] }
  0x33   : > { %501 = vmatpush.msrb.mxu0 %v364_v4  ;;  %494 = vmatpush.msra.mxu3 %v335_v14  ;;  %v402_v46 = vld [vmem:[%s1222_s1 + $0x398] sm:$0xff]  ;;  %v352_v53 = vld [vmem:[%s1222_s1 + $0x208] sm:$0xff]  ;;  %v369_v54 = vld [vmem:[%s1222_s1 + $0x290] sm:$0xff] }
  0x34   : > { %542 = vmatpush.msrb.mxu2 %v395_v7  ;;  %521 = vmatpush.msrb.mxu1 %v380_v9  ;;  %v370_v50 = vld [vmem:[%s1222_s1 + $0x298] sm:$0xff]  ;;  %v383_v55 = vld [vmem:[%s1222_s1 + $0x300] sm:$0xff]  ;;  %v400_v56 = vld [vmem:[%s1222_s1 + $0x388] sm:$0xff] }
  0x35   : > { %502 = vmatpush.msrb.mxu0 %v363_v8  ;;  %716 = vmatpush.msk.msrb.mxu3 %vm415_vm0, %v406_v18  ;;  %v285_v57 = vld [vmem:[%s1078_s8 + $0x30] sm:$0xff]  ;;  %v351_v58 = vld [vmem:[%s1222_s1 + $0x200] sm:$0xff]  ;;  %v368_v59 = vld [vmem:[%s1222_s1 + $0x288] sm:$0xff] }
  0x36   : > { %543 = vmatpush.msrb.mxu2 %v394_v11  ;;  %522 = vmatpush.msrb.mxu1 %v379_v13  ;;  %v399_v60 = vld [vmem:[%s1222_s1 + $0x380] sm:$0xff]  ;;  %v286_v62 = vld [vmem:[%s1078_s8 + $0x38] sm:$0xff]  ;;  %v284_v0 = vld [vmem:[%s1078_s8 + $0x28] sm:$0xff] }
  0x37   : > { %503 = vmatpush.msrb.mxu0 %v362_v12  ;;  %568 = vmatpush.msrb.mxu3 %v405_v23  ;;  %v283_v61 = vld [vmem:[%s1078_s8 + $0x20] sm:$0xff]  ;;  %v586_v1 = vld [vmem:[%s1224_s3 + $0x30] sm:$0x3]  ;;  %v585_v2 = vld [vmem:[%s1224_s3 + $0x28] sm:$0xff] }
  0x38   : > { %544 = vmatpush.msrb.mxu2 %v393_v15  ;;  %523 = vmatpush.msrb.mxu1 %v378_v17  ;;  %v367_v63 = vld [vmem:[%s1222_s1 + $0x280] sm:$0xff]  ;;  %v583_v4 = vld [vmem:[%s1224_s3 + $0x18] sm:$0xff]  ;;  %v582_v5 = vld [vmem:[%s1224_s3 + $0x10] sm:$0xff] }
  0x39   : > { %504 = vmatpush.msrb.mxu0 %v361_v16  ;;  %569 = vmatpush.msrb.mxu3 %v404_v26  ;;  %v584_v3 = vld [vmem:[%s1224_s3 + $0x20] sm:$0xff]  ;;  %v581_v6 = vld [vmem:[%s1224_s3 + $0x8] sm:$0xff] }
  0x3a   : > { %545 = vmatpush.msrb.mxu2 %v392_v19  ;;  %524 = vmatpush.msrb.mxu1 %v377_v21  ;;  %v580_v7 = vld [vmem:[%s1224_s3] sm:$0xff] }
  0x3b   : > { %505 = vmatpush.msrb.mxu0 %v360_v20  ;;  %475 = vmatmul.f32.vlgmr.msra.gmra.mxu2 %v281_v30  ;;  %v731_v8 = vld [vmem:[%s1223_s2] ss:$0 sm:$0xff] }
  0x3c   : > { %546 = vmatpush.msrb.mxu2 %v391_v22  ;;  %525 = vmatpush.msrb.mxu1 %v376_v25  ;;  %v732_v26 = vld [vmem:[%s1225_s4] ss:$0 sm:$0xff] }
  0x3d   : > { %506 = vmatpush.msrb.mxu0 %v359_v24  ;;  %570 = vmatpush.msrb.mxu3 %v403_v34 }
  0x3e   : > { %547 = vmatpush.msrb.mxu2 %v390_v27  ;;  %526 = vmatpush.msrb.mxu1 %v375_v29  ;;  %v733_v29 = vld [vmem:[%s1226_s5] ss:$0 sm:$0xff] }
  0x3f   : > { %507 = vmatpush.msrb.mxu0 %v358_v28  ;;  %495 = vmatmul.f32.vlgmr.msra.gmra.mxu3 %v282_v42 }
  0x40   : > { %548 = vmatpush.msrb.mxu2 %v389_v31  ;;  %527 = vmatpush.msrb.mxu1 %v374_v33  ;;  %v734_v33 = vld [vmem:[#allocation2] ss:$0 sm:$0xff] }
  0x41   : > { %508 = vmatpush.msrb.mxu0 %v357_v32  ;;  %571 = vmatpush.msrb.mxu3 %v402_v46 }
  0x42   : > { %549 = vmatpush.msrb.mxu2 %v388_v35  ;;  %528 = vmatpush.msrb.mxu1 %v373_v37 }
  0x43   : > { %509 = vmatpush.msrb.mxu0 %v356_v36  ;;  %455 = vmatmul.f32.vlgmr.msra.gmra.mxu1 %v280_v48 }
  0x44   : > { %435 = vmatmul.f32.vlgmr.msra.gmra.mxu0 %v279_v38  ;;  %550 = vmatpush.msrb.mxu2 %v387_v39 }
  0x45   : > { %510 = vmatpush.msrb.mxu0 %v355_v40  ;;  %529 = vmatpush.msrb.mxu1 %v372_v41 }
  0x46   : > { %551 = vmatpush.msrb.mxu2 %v386_v43  ;;  %572 = vmatpush.msrb.mxu3 %v401_v52 }
  0x47   : > { %511 = vmatpush.msrb.mxu0 %v354_v44  ;;  %530 = vmatpush.msrb.mxu1 %v371_v45 }
  0x48   : > { %552 = vmatpush.msrb.mxu2 %v385_v47  ;;  %573 = vmatpush.msrb.mxu3 %v400_v56 }
  0x49   : > { %512 = vmatpush.msrb.mxu0 %v353_v49  ;;  %531 = vmatpush.msrb.mxu1 %v370_v50 }
  0x4a   : > { %553 = vmatpush.msrb.mxu2 %v384_v51  ;;  %574 = vmatpush.msrb.mxu3 %v399_v60 }
  0x4b   : > { %513 = vmatpush.msrb.mxu0 %v352_v53  ;;  %532 = vmatpush.msrb.mxu1 %v369_v54 }
  0x4c   : > { %554 = vmatpush.msrb.mxu2 %v383_v55  ;;  %717 = vmatmul.msk.f32.vlgmr.msrb.gmra.mxu3 %vm411_vm1, %v286_v62 }
  0x4d   : > { %555 = vmatmul.f32.vlgmr.msrb.gmra.mxu2 %v285_v57  ;;  %514 = vmatpush.msrb.mxu0 %v351_v58 }
  0x4e   : > { %533 = vmatpush.msrb.mxu1 %v368_v59  ;;  %515 = vmatmul.f32.vlgmr.msrb.gmra.mxu0 %v283_v61 }
  0x4f   : > { %718 = vmatpush.msk.msra.mxu3 %vm595_vm2, %v586_v1 }
  0x50   : > { %534 = vmatpush.msrb.mxu1 %v367_v63 }
  0x51   : > { %535 = vmatmul.f32.vlgmr.msrb.gmra.mxu1 %v284_v0  ;;  %609 = vmatpush.msra.mxu3 %v585_v2 }
  0x53   : > { %610 = vmatpush.msra.mxu3 %v584_v3 }
  0x55   : > { %611 = vmatpush.msra.mxu3 %v583_v4 }
  0x57   : > { %612 = vmatpush.msra.mxu3 %v582_v5 }
  0x59   : > { %613 = vmatpush.msra.mxu3 %v581_v6 }
  0x5b   : > { %614 = vmatpush.msra.mxu3 %v580_v7 }
  0xbe   : > { %v476_v12 = vpop.f32.mrf.mxu2 }
  0xc0   : > { %v456_v11 = vpop.f32.mrf.mxu1 }
  0xc1   : > { %v436_v9 = vpop.f32.mrf.mxu0 }
  0xc2   : > { %v437_v10 = vadd.f32 %v731_v8, %v436_v9  ;;  %v496_v15 = vpop.f32.mrf.mxu3 }
  0xc4   : > { %v457_v13 = vadd.f32 %v456_v11, %v437_v10 }
  0xc6   : > { %v477_v14 = vadd.f32 %v476_v12, %v457_v13 }
  0xc8   : > { %v497_v16 = vadd.f32 %v496_v15, %v477_v14 }
  0xcb   : > { %v516_v17 = vpop.f32.mrf.mxu0 }
  0xcc   : > { %v517_v18 = vadd.f32 %v516_v17, %v497_v16 }
  0xce   : > { %v536_v19 = vpop.f32.mrf.mxu1 }
  0xcf   : > { %v537_v20 = vadd.f32 %v536_v19, %v517_v18  ;;  %v576_v23 = vpop.f32.mrf.mxu3 }
  0xd0   : > { %v556_v21 = vpop.f32.mrf.mxu2 }
  0xd1   : > { %v557_v22 = vadd.f32 %v556_v21, %v537_v20 }
  0xd3   : > { %v577_v24 = vadd.f32 %v576_v23, %v557_v22 }
  0xd5   : > { %v579_v25 = vmax.f32 %v577_v24, 0.0 }
  0xd7   : > { %719 = vmatmul.msk.f32.vlgmr.msra.gmra.mxu3 %vm591_vm3, %v579_v25 }
 0x15a   : > { %v616_v27 = vpop.f32.mrf.mxu3 }
 0x15b   : > { %v617_v28 = vadd.f32 %v732_v26, %v616_v27 }
 0x15d   : > { %v619_v30 = vmax.f32 %v617_v28, 0.0 }
 0x15f   : > { %v624_v31 = vmul.f32 %v733_v29, %v619_v30 }
 0x161   : > { %v626_v32 = vsel %vm625_vm4, %v624_v31, 0.0 }
 0x162   : > { %627 = vadd.xlane.f32.xlu0 %v626_v32 }
 0x1d5   : > { %v628_v34 = vpop.xlane.xlu0 %627 }
 0x1d6   : > { %v633_v35 = vadd.f32 %v734_v33, %v628_v34 }
 0x1d8   : > { %v634_v36 = vsub.f32 0.0, %v633_v35 }
 0x1da   : > { %v635_v37 = vmul.f32 1.442695, %v634_v36 }
 0x1dc   : > { %735 = vpow2.f32 %v635_v37 }
 0x1e2   : > { %v736_v38 = vpop.eup %735 }
 0x1e3   : > { %v637_v39 = vadd.f32 1.0, %v736_v38 }
 0x1e5   : > { %737 = vrcp.f32 %v637_v39  ;;  %v649_v43 = vand.u32 2147483648, %v637_v39  ;;  %v647_v45 = vand.u32 2147483647, %v637_v39  ;;  %vm643_vm6 = vweird.f32 %v637_v39 }
 0x1e7   : > { %v650_v47 = vor.u32 1.1754944e-38, %v649_v43  ;;  %vm648_vm9 = vcmp.eq.f32.partialorder %v647_v45, 8.507059e+37 }
 0x1eb   : > { %v738_v40 = vpop.eup %737 }
 0x1ec   : > { %v639_v41 = vmul.f32 %v738_v40, %v637_v39  ;;  %vm644_vm5 = vweird.f32 %v738_v40 }
 0x1ed   : > { %vm645_vm7 = vmor %vm643_vm6, %vm644_vm5 }
 0x1ee   : > { %v640_v42 = vsub.f32 1.0, %v639_v41 }
 0x1f0   : > { %v641_v44 = vmul.f32 %v738_v40, %v640_v42 }
 0x1f2   : > { %v642_v46 = vadd.f32 %v738_v40, %v641_v44 }
 0x1f4   : > { %v646_v48 = vsel %vm645_vm7, %v738_v40, %v642_v46 }
 0x1f5   : > { %v651_v49 = vsel %vm648_vm9, %v650_v47, %v646_v48 }
 0x1f6   : > { %654 = vst.msk [vmem:[%s278_s11] sm:$0xff] %vm653_vm8, %v651_v49 }
 0x1f7 PF: > { %s19_s26 = sadd.s32 1, %s745_s26  }
 0x1f8   : > { %p16_p4 = scmp.ge.s32.totalorder %s19_s26, 4  }
 0x1fa   :  { %18 = sbr.rel (!%p16_p4) target bundleno = 3 (0x3), region = 78 }

</bundles_post_ra>
